<compile_context>
chip_gen: v6e
topology: v6e:2x2x1
jax: 0.10.0
libtpu: 0.0.40
codegen_flags: <defaults>
</compile_context>

<pallas_src>
import jax
import jax.numpy as jnp
from jax.experimental import pallas as pl
from jax.experimental.pallas import tpu as pltpu

# ---------------- configuration (mirrors the torch module __init__) ------------
SCALER = 2.0
N_PARTICLES = 4
DELTAR = ((0, 1), (2, 3))
MIJ = ((0, 1), (0, 1, 2, 3))
DELTAPHI = ((0, 2),)
DELTAETA = ((1, 3),)
N_OUT = 8                                        # E, px, py, pz, pT, eta, phi, logE
N_AUG = len(DELTAR) + len(MIJ) + len(DELTAPHI) + len(DELTAETA)
N_TOTAL = N_PARTICLES * N_OUT + N_AUG            # 38 output channels
EPS = 1e-10

MAX_TB = 4096                                    # lane-axis (batch) tile, multiple of 128


# ---------------- in-kernel math helpers (VPU/EUP friendly) ---------------------
def _atan01(q):
    """arctan(q) for q in [0, 1] (Abramowitz & Stegun 4.4.47, |err| <= 1e-5)."""
    z = q * q
    p = (((0.0208351 * z - 0.0851330) * z + 0.1801410) * z - 0.3302995) * z + 0.9998660
    return p * q


def _atan2(y, x):
    """Elementwise atan2 from compare/select (VPU) + one approx reciprocal (EUP)."""
    ax = jnp.abs(x)
    ay = jnp.abs(y)
    mx = jnp.maximum(ax, ay)
    mn = jnp.minimum(ax, ay)
    q = mn * pl.reciprocal(mx, approx=True)      # EUP vrcp, no Newton refinement
    q = jnp.where(mx > 0.0, q, 0.0)              # atan2(0, 0) -> 0 (matches jnp)
    a = _atan01(q)                               # q in [0, 1]
    a = jnp.where(ay > ax, 0.5 * jnp.pi - a, a)
    a = jnp.where(x < 0.0, jnp.pi - a, a)
    return jnp.where(y < 0.0, -a, a)


# --------------------------------- kernel --------------------------------------
def aug_features_kernel(x_ref, o_ref):
    # x_ref: (4, P, TB)    components (E, px, py, pz) x particles x batch-on-lanes
    # o_ref: (N_TOTAL, TB) torch-ordered channels x batch-on-lanes
    x = x_ref[...] * SCALER                      # inverse preprocess (float scaler)
    Es, Xs, Ys, Zs = x[0], x[1], x[2], x[3]      # each (P, TB)

    pt2 = Xs * Xs + Ys * Ys                      # shared between PT and |p|
    PTs = jnp.sqrt(jnp.maximum(pt2, EPS))
    Ps = jnp.sqrt(jnp.maximum(pt2 + Zs * Zs, EPS))
    # arctanh(Zs/Ps) == 0.5*log((Ps+Zs)/(Ps-Zs)): one divide instead of two.
    Etas = 0.5 * jnp.log((Ps + Zs) / (Ps - Zs))
    Phis = _atan2(Ys, Xs)
    logEs = jnp.log(Es)

    feats = (Es, Xs, Ys, Zs, PTs, Etas, Phis, logEs)
    # Per-particle features in torch's interleaved order (row = p*N_OUT + f).
    # Assemble the 8 rows of each particle into one (8, TB) slab so each store
    # is an aligned, unmasked full-sublane-tile store (rows p*8 .. p*8+7).
    for p in range(N_PARTICLES):
        part = jnp.concatenate([f[p:p + 1, :] for f in feats], axis=0)   # (8, TB)
        o_ref[p * N_OUT:(p + 1) * N_OUT, :] = part

    # Augmented pairwise features: rows 32..37, emitted with a single store.
    aug_rows = []
    for (i, j) in DELTAR:
        de = jnp.abs(Etas[i:i + 1, :] - Etas[j:j + 1, :])
        dp = jnp.abs(Phis[i:i + 1, :] - Phis[j:j + 1, :])
        dp = jnp.where(dp > jnp.pi, 2.0 * jnp.pi - dp, dp)
        aug_rows.append(jnp.sqrt(jnp.maximum(de * de + dp * dp, EPS)))
    for ids in MIJ:
        Ei = sum(Es[k:k + 1, :] for k in ids)
        Pxi = sum(Xs[k:k + 1, :] for k in ids)
        Pyi = sum(Ys[k:k + 1, :] for k in ids)
        Pzi = sum(Zs[k:k + 1, :] for k in ids)
        m2 = Ei * Ei - Pxi * Pxi - Pyi * Pyi - Pzi * Pzi
        aug_rows.append(jnp.sqrt(jnp.maximum(m2, EPS)))
    for (i, j) in DELTAPHI:
        dp = jnp.abs(Phis[i:i + 1, :] - Phis[j:j + 1, :])
        aug_rows.append(jnp.where(dp > jnp.pi, 2.0 * jnp.pi - dp, dp))
    for (i, j) in DELTAETA:
        aug_rows.append(jnp.abs(Etas[i:i + 1, :] - Etas[j:j + 1, :]))
    o_ref[N_PARTICLES * N_OUT:N_TOTAL, :] = jnp.concatenate(aug_rows, axis=0)


# --------------------------------- wrapper --------------------------------------
def _tile_config(B):
    """Static (padded_B, lane_tile). Full-extent lane blocks are legal for small B."""
    if B <= MAX_TB:
        return B, B
    n_blocks = -(-B // MAX_TB)
    return n_blocks * MAX_TB, MAX_TB


@jax.jit
def aug_features(x):
    B = x.shape[0]
    x = x.astype(jnp.float32)
    # (B, 16) -> (component=4, particle=4, B): batch lands on the lane axis.
    xt = jnp.transpose(x.reshape(B, N_PARTICLES, 4), (2, 1, 0))
    Bp, TB = _tile_config(B)
    if Bp != B:
        # pad with 1.0 so padded lanes stay finite (they are sliced off below)
        xt = jnp.pad(xt, ((0, 0), (0, 0), (0, Bp - B)), constant_values=1.0)

    out = pl.pallas_call(
        aug_features_kernel,
        grid=(Bp // TB,),
        in_specs=[pl.BlockSpec((4, N_PARTICLES, TB), lambda i: (0, 0, i))],
        out_specs=pl.BlockSpec((N_TOTAL, TB), lambda i: (0, i)),
        out_shape=jax.ShapeDtypeStruct((N_TOTAL, Bp), jnp.float32),
        compiler_params=pltpu.CompilerParams(
            dimension_semantics=("parallel",)),      # megacore sharding on v7x
    )(xt)

    if Bp != B:
        out = out[:, :B]
    # Single (38, B) -> (B, 38) relayout; rows are already in torch channel order.
    return jnp.transpose(out, (1, 0))


# ------------------------- pure-JAX reference (for checking) --------------------
def aug_features_ref(x):
    B = x.shape[0]
    x = x * SCALER
    x4 = jnp.transpose(x.reshape(B, N_PARTICLES, 4), (0, 2, 1))
    Es, Xs, Ys, Zs = x4[:, 0], x4[:, 1], x4[:, 2], x4[:, 3]
    Ps = jnp.sqrt(jnp.maximum(Xs**2 + Ys**2 + Zs**2, EPS))
    PTs = jnp.sqrt(jnp.maximum(Xs**2 + Ys**2, EPS))
    Etas = jnp.arctanh(Zs / Ps)
    Phis = jnp.arctan2(Ys, Xs)
    out = jnp.stack([Es, Xs, Ys, Zs, PTs, Etas, Phis, jnp.log(Es)], axis=1)
    main = jnp.transpose(out, (0, 2, 1)).reshape(B, N_PARTICLES * N_OUT)
    aug = []
    for i, j in DELTAR:
        de = jnp.abs(Etas[:, i] - Etas[:, j])
        dp = jnp.abs(Phis[:, i] - Phis[:, j])
        dp = jnp.where(dp > jnp.pi, 2.0 * jnp.pi - dp, dp)
        aug.append(jnp.sqrt(jnp.maximum(de**2 + dp**2, EPS))[:, None])
    for ids in MIJ:
        Ei = sum(Es[:, k] for k in ids)
        Pxi = sum(Xs[:, k] for k in ids)
        Pyi = sum(Ys[:, k] for k in ids)
        Pzi = sum(Zs[:, k] for k in ids)
        aug.append(jnp.sqrt(jnp.maximum(Ei**2 - Pxi**2 - Pyi**2 - Pzi**2, EPS))[:, None])
    for i, j in DELTAPHI:
        dp = jnp.abs(Phis[:, i] - Phis[:, j])
        aug.append(jnp.where(dp > jnp.pi, 2.0 * jnp.pi - dp, dp)[:, None])
    for i, j in DELTAETA:
        aug.append(jnp.abs(Etas[:, i] - Etas[:, j])[:, None])
    return jnp.concatenate([main] + aug, axis=-1)


if __name__ == "__main__":
    B = 2
    key = jax.random.PRNGKey(0)
    kp, km = jax.random.split(key)
    # Build physically valid 4-vectors (E >= |p|) so log/atanh are well defined.
    p3 = jax.random.normal(kp, (B, N_PARTICLES, 3), dtype=jnp.float32) * 10.0
    m = jnp.abs(jax.random.normal(km, (B, N_PARTICLES), dtype=jnp.float32)) * 5.0 + 1.0
    E = jnp.sqrt(jnp.sum(p3 * p3, axis=-1) + m * m)
    fourvec = jnp.concatenate([E[..., None], p3], axis=-1)        # (B, P, 4) -> (E,px,py,pz)
    x = (fourvec / SCALER).reshape(B, N_PARTICLES * 4)            # module-space input (B, 16)

    out = jax.block_until_ready(aug_features(x))
    ref = aug_features_ref(x)

    assert out.shape == (B, N_PARTICLES * N_OUT + N_AUG), out.shape
    if not jnp.allclose(out, ref, rtol=2e-3, atol=2e-3):
        raise AssertionError("Pallas kernel output does not match reference")
    print("KERNEL_OK")
</pallas_src>

<mosaic_0001>
module attributes {stable_mosaic.version = 11 : i64} {
  func.func @aug_features_kernel(%arg0: i32, %arg1: memref<4x4x2xf32, #tpu.memory_space<vmem>>, %arg2: memref<38x2xf32, #tpu.memory_space<vmem>>) attributes {dimension_semantics = [#tpu.dimension_semantics<parallel>], iteration_bounds = array<i64: 1>, scalar_prefetch = 0 : i64, scratch_operands = 0 : i64, tpu.core_type = #tpu.core_type<tc>, window_params = [{transform_indices = @transform_0, window_bounds = array<i64: 4, 4, 2>}, {transform_indices = @transform_1, window_bounds = array<i64: 38, 2>}]} {
    %c0 = arith.constant 0 : index
    %c0_0 = arith.constant 0 : index
    %c0_1 = arith.constant 0 : index
    %0 = vector.load %arg1[%c0, %c0_0, %c0_1] : memref<4x4x2xf32, #tpu.memory_space<vmem>>, vector<4x4x2xf32>
    %cst = arith.constant 2.000000e+00 : f32
    %1 = vector.broadcast %cst : f32 to vector<4x4x2xf32>
    %2 = arith.mulf %0, %1 : vector<4x4x2xf32>
    %3 = vector.extract_strided_slice %2 {offsets = [0, 0, 0], sizes = [1, 4, 2], strides = [1, 1, 1]} : vector<4x4x2xf32> to vector<1x4x2xf32>
    %4 = vector.shape_cast %3 : vector<1x4x2xf32> to vector<4x2xf32>
    %5 = vector.extract_strided_slice %2 {offsets = [1, 0, 0], sizes = [1, 4, 2], strides = [1, 1, 1]} : vector<4x4x2xf32> to vector<1x4x2xf32>
    %6 = vector.shape_cast %5 : vector<1x4x2xf32> to vector<4x2xf32>
    %7 = vector.extract_strided_slice %2 {offsets = [2, 0, 0], sizes = [1, 4, 2], strides = [1, 1, 1]} : vector<4x4x2xf32> to vector<1x4x2xf32>
    %8 = vector.shape_cast %7 : vector<1x4x2xf32> to vector<4x2xf32>
    %9 = vector.extract_strided_slice %2 {offsets = [3, 0, 0], sizes = [1, 4, 2], strides = [1, 1, 1]} : vector<4x4x2xf32> to vector<1x4x2xf32>
    %10 = vector.shape_cast %9 : vector<1x4x2xf32> to vector<4x2xf32>
    %11 = arith.mulf %6, %6 : vector<4x2xf32>
    %12 = arith.mulf %8, %8 : vector<4x2xf32>
    %13 = arith.addf %11, %12 : vector<4x2xf32>
    %cst_2 = arith.constant 1.000000e-10 : f32
    %14 = vector.broadcast %cst_2 : f32 to vector<4x2xf32>
    %15 = arith.maximumf %13, %14 : vector<4x2xf32>
    %16 = math.sqrt %15 : vector<4x2xf32>
    %17 = arith.mulf %10, %10 : vector<4x2xf32>
    %18 = arith.addf %13, %17 : vector<4x2xf32>
    %cst_3 = arith.constant 1.000000e-10 : f32
    %19 = vector.broadcast %cst_3 : f32 to vector<4x2xf32>
    %20 = arith.maximumf %18, %19 : vector<4x2xf32>
    %21 = math.sqrt %20 : vector<4x2xf32>
    %22 = arith.addf %21, %10 : vector<4x2xf32>
    %23 = arith.subf %21, %10 : vector<4x2xf32>
    %24 = arith.divf %22, %23 : vector<4x2xf32>
    %25 = math.log %24 : vector<4x2xf32>
    %cst_4 = arith.constant 5.000000e-01 : f32
    %26 = vector.broadcast %cst_4 : f32 to vector<4x2xf32>
    %27 = arith.mulf %26, %25 : vector<4x2xf32>
    %28 = math.absf %6 : vector<4x2xf32>
    %29 = math.absf %8 : vector<4x2xf32>
    %30 = arith.maximumf %28, %29 : vector<4x2xf32>
    %31 = arith.minimumf %28, %29 : vector<4x2xf32>
    %32 = tpu.reciprocal %30 {approx = true} : vector<4x2xf32> -> vector<4x2xf32>
    %33 = arith.mulf %31, %32 : vector<4x2xf32>
    %cst_5 = arith.constant 0.000000e+00 : f32
    %34 = vector.broadcast %cst_5 : f32 to vector<4x2xf32>
    %35 = arith.cmpf ogt, %30, %34 : vector<4x2xf32>
    %cst_6 = arith.constant 0.000000e+00 : f32
    %36 = vector.broadcast %cst_6 : f32 to vector<4x2xf32>
    %37 = arith.select %35, %33, %36 : vector<4x2xi1>, vector<4x2xf32>
    %38 = arith.mulf %37, %37 : vector<4x2xf32>
    %cst_7 = arith.constant 2.083510e-02 : f32
    %39 = vector.broadcast %cst_7 : f32 to vector<4x2xf32>
    %40 = arith.mulf %39, %38 : vector<4x2xf32>
    %cst_8 = arith.constant 8.513300e-02 : f32
    %41 = vector.broadcast %cst_8 : f32 to vector<4x2xf32>
    %42 = arith.subf %40, %41 : vector<4x2xf32>
    %43 = arith.mulf %42, %38 : vector<4x2xf32>
    %cst_9 = arith.constant 1.801410e-01 : f32
    %44 = vector.broadcast %cst_9 : f32 to vector<4x2xf32>
    %45 = arith.addf %43, %44 : vector<4x2xf32>
    %46 = arith.mulf %45, %38 : vector<4x2xf32>
    %cst_10 = arith.constant 0.330299497 : f32
    %47 = vector.broadcast %cst_10 : f32 to vector<4x2xf32>
    %48 = arith.subf %46, %47 : vector<4x2xf32>
    %49 = arith.mulf %48, %38 : vector<4x2xf32>
    %cst_11 = arith.constant 9.998660e-01 : f32
    %50 = vector.broadcast %cst_11 : f32 to vector<4x2xf32>
    %51 = arith.addf %49, %50 : vector<4x2xf32>
    %52 = arith.mulf %51, %37 : vector<4x2xf32>
    %53 = arith.cmpf ogt, %29, %28 : vector<4x2xf32>
    %cst_12 = arith.constant 1.57079637 : f32
    %54 = vector.broadcast %cst_12 : f32 to vector<4x2xf32>
    %55 = arith.subf %54, %52 : vector<4x2xf32>
    %56 = arith.select %53, %55, %52 : vector<4x2xi1>, vector<4x2xf32>
    %cst_13 = arith.constant 0.000000e+00 : f32
    %57 = vector.broadcast %cst_13 : f32 to vector<4x2xf32>
    %58 = arith.cmpf olt, %6, %57 : vector<4x2xf32>
    %cst_14 = arith.constant 3.14159274 : f32
    %59 = vector.broadcast %cst_14 : f32 to vector<4x2xf32>
    %60 = arith.subf %59, %56 : vector<4x2xf32>
    %61 = arith.select %58, %60, %56 : vector<4x2xi1>, vector<4x2xf32>
    %cst_15 = arith.constant 0.000000e+00 : f32
    %62 = vector.broadcast %cst_15 : f32 to vector<4x2xf32>
    %63 = arith.cmpf olt, %8, %62 : vector<4x2xf32>
    %cst_16 = arith.constant 0.000000e+00 : f32
    %64 = vector.broadcast %cst_16 : f32 to vector<4x2xf32>
    %65 = arith.subf %64, %61 : vector<4x2xf32>
    %66 = arith.select %63, %65, %61 : vector<4x2xi1>, vector<4x2xf32>
    %67 = math.log %4 : vector<4x2xf32>
    %68 = vector.extract_strided_slice %4 {offsets = [0, 0], sizes = [1, 2], strides = [1, 1]} : vector<4x2xf32> to vector<1x2xf32>
    %69 = vector.extract_strided_slice %6 {offsets = [0, 0], sizes = [1, 2], strides = [1, 1]} : vector<4x2xf32> to vector<1x2xf32>
    %70 = vector.extract_strided_slice %8 {offsets = [0, 0], sizes = [1, 2], strides = [1, 1]} : vector<4x2xf32> to vector<1x2xf32>
    %71 = vector.extract_strided_slice %10 {offsets = [0, 0], sizes = [1, 2], strides = [1, 1]} : vector<4x2xf32> to vector<1x2xf32>
    %72 = vector.extract_strided_slice %16 {offsets = [0, 0], sizes = [1, 2], strides = [1, 1]} : vector<4x2xf32> to vector<1x2xf32>
    %73 = vector.extract_strided_slice %27 {offsets = [0, 0], sizes = [1, 2], strides = [1, 1]} : vector<4x2xf32> to vector<1x2xf32>
    %74 = vector.extract_strided_slice %66 {offsets = [0, 0], sizes = [1, 2], strides = [1, 1]} : vector<4x2xf32> to vector<1x2xf32>
    %75 = vector.extract_strided_slice %67 {offsets = [0, 0], sizes = [1, 2], strides = [1, 1]} : vector<4x2xf32> to vector<1x2xf32>
    %76 = tpu.concatenate %68, %69, %70, %71, %72, %73, %74, %75 in 0 : vector<1x2xf32>, vector<1x2xf32>, vector<1x2xf32>, vector<1x2xf32>, vector<1x2xf32>, vector<1x2xf32>, vector<1x2xf32>, vector<1x2xf32> -> vector<8x2xf32>
    %c0_17 = arith.constant 0 : index
    %c0_18 = arith.constant 0 : index
    %77 = vector.load %arg2[%c0_17, %c0_18] : memref<38x2xf32, #tpu.memory_space<vmem>>, vector<8x2xf32>
    tpu.vector_store %arg2[%c0_17, %c0_18], %76 {strides = array<i32>} : memref<38x2xf32, #tpu.memory_space<vmem>>, vector<8x2xf32>,
    %78 = vector.extract_strided_slice %4 {offsets = [1, 0], sizes = [1, 2], strides = [1, 1]} : vector<4x2xf32> to vector<1x2xf32>
    %79 = vector.extract_strided_slice %6 {offsets = [1, 0], sizes = [1, 2], strides = [1, 1]} : vector<4x2xf32> to vector<1x2xf32>
    %80 = vector.extract_strided_slice %8 {offsets = [1, 0], sizes = [1, 2], strides = [1, 1]} : vector<4x2xf32> to vector<1x2xf32>
    %81 = vector.extract_strided_slice %10 {offsets = [1, 0], sizes = [1, 2], strides = [1, 1]} : vector<4x2xf32> to vector<1x2xf32>
    %82 = vector.extract_strided_slice %16 {offsets = [1, 0], sizes = [1, 2], strides = [1, 1]} : vector<4x2xf32> to vector<1x2xf32>
    %83 = vector.extract_strided_slice %27 {offsets = [1, 0], sizes = [1, 2], strides = [1, 1]} : vector<4x2xf32> to vector<1x2xf32>
    %84 = vector.extract_strided_slice %66 {offsets = [1, 0], sizes = [1, 2], strides = [1, 1]} : vector<4x2xf32> to vector<1x2xf32>
    %85 = vector.extract_strided_slice %67 {offsets = [1, 0], sizes = [1, 2], strides = [1, 1]} : vector<4x2xf32> to vector<1x2xf32>
    %86 = tpu.concatenate %78, %79, %80, %81, %82, %83, %84, %85 in 0 : vector<1x2xf32>, vector<1x2xf32>, vector<1x2xf32>, vector<1x2xf32>, vector<1x2xf32>, vector<1x2xf32>, vector<1x2xf32>, vector<1x2xf32> -> vector<8x2xf32>
    %c8 = arith.constant 8 : index
    %c0_19 = arith.constant 0 : index
    %87 = vector.load %arg2[%c8, %c0_19] : memref<38x2xf32, #tpu.memory_space<vmem>>, vector<8x2xf32>
    tpu.vector_store %arg2[%c8, %c0_19], %86 {strides = array<i32>} : memref<38x2xf32, #tpu.memory_space<vmem>>, vector<8x2xf32>,
    %88 = vector.extract_strided_slice %4 {offsets = [2, 0], sizes = [1, 2], strides = [1, 1]} : vector<4x2xf32> to vector<1x2xf32>
    %89 = vector.extract_strided_slice %6 {offsets = [2, 0], sizes = [1, 2], strides = [1, 1]} : vector<4x2xf32> to vector<1x2xf32>
    %90 = vector.extract_strided_slice %8 {offsets = [2, 0], sizes = [1, 2], strides = [1, 1]} : vector<4x2xf32> to vector<1x2xf32>
    %91 = vector.extract_strided_slice %10 {offsets = [2, 0], sizes = [1, 2], strides = [1, 1]} : vector<4x2xf32> to vector<1x2xf32>
    %92 = vector.extract_strided_slice %16 {offsets = [2, 0], sizes = [1, 2], strides = [1, 1]} : vector<4x2xf32> to vector<1x2xf32>
    %93 = vector.extract_strided_slice %27 {offsets = [2, 0], sizes = [1, 2], strides = [1, 1]} : vector<4x2xf32> to vector<1x2xf32>
    %94 = vector.extract_strided_slice %66 {offsets = [2, 0], sizes = [1, 2], strides = [1, 1]} : vector<4x2xf32> to vector<1x2xf32>
    %95 = vector.extract_strided_slice %67 {offsets = [2, 0], sizes = [1, 2], strides = [1, 1]} : vector<4x2xf32> to vector<1x2xf32>
    %96 = tpu.concatenate %88, %89, %90, %91, %92, %93, %94, %95 in 0 : vector<1x2xf32>, vector<1x2xf32>, vector<1x2xf32>, vector<1x2xf32>, vector<1x2xf32>, vector<1x2xf32>, vector<1x2xf32>, vector<1x2xf32> -> vector<8x2xf32>
    %c16 = arith.constant 16 : index
    %c0_20 = arith.constant 0 : index
    %97 = vector.load %arg2[%c16, %c0_20] : memref<38x2xf32, #tpu.memory_space<vmem>>, vector<8x2xf32>
    tpu.vector_store %arg2[%c16, %c0_20], %96 {strides = array<i32>} : memref<38x2xf32, #tpu.memory_space<vmem>>, vector<8x2xf32>,
    %98 = vector.extract_strided_slice %4 {offsets = [3, 0], sizes = [1, 2], strides = [1, 1]} : vector<4x2xf32> to vector<1x2xf32>
    %99 = vector.extract_strided_slice %6 {offsets = [3, 0], sizes = [1, 2], strides = [1, 1]} : vector<4x2xf32> to vector<1x2xf32>
    %100 = vector.extract_strided_slice %8 {offsets = [3, 0], sizes = [1, 2], strides = [1, 1]} : vector<4x2xf32> to vector<1x2xf32>
    %101 = vector.extract_strided_slice %10 {offsets = [3, 0], sizes = [1, 2], strides = [1, 1]} : vector<4x2xf32> to vector<1x2xf32>
    %102 = vector.extract_strided_slice %16 {offsets = [3, 0], sizes = [1, 2], strides = [1, 1]} : vector<4x2xf32> to vector<1x2xf32>
    %103 = vector.extract_strided_slice %27 {offsets = [3, 0], sizes = [1, 2], strides = [1, 1]} : vector<4x2xf32> to vector<1x2xf32>
    %104 = vector.extract_strided_slice %66 {offsets = [3, 0], sizes = [1, 2], strides = [1, 1]} : vector<4x2xf32> to vector<1x2xf32>
    %105 = vector.extract_strided_slice %67 {offsets = [3, 0], sizes = [1, 2], strides = [1, 1]} : vector<4x2xf32> to vector<1x2xf32>
    %106 = tpu.concatenate %98, %99, %100, %101, %102, %103, %104, %105 in 0 : vector<1x2xf32>, vector<1x2xf32>, vector<1x2xf32>, vector<1x2xf32>, vector<1x2xf32>, vector<1x2xf32>, vector<1x2xf32>, vector<1x2xf32> -> vector<8x2xf32>
    %c24 = arith.constant 24 : index
    %c0_21 = arith.constant 0 : index
    %107 = vector.load %arg2[%c24, %c0_21] : memref<38x2xf32, #tpu.memory_space<vmem>>, vector<8x2xf32>
    tpu.vector_store %arg2[%c24, %c0_21], %106 {strides = array<i32>} : memref<38x2xf32, #tpu.memory_space<vmem>>, vector<8x2xf32>,
    %108 = vector.extract_strided_slice %27 {offsets = [0, 0], sizes = [1, 2], strides = [1, 1]} : vector<4x2xf32> to vector<1x2xf32>
    %109 = vector.extract_strided_slice %27 {offsets = [1, 0], sizes = [1, 2], strides = [1, 1]} : vector<4x2xf32> to vector<1x2xf32>
    %110 = arith.subf %108, %109 : vector<1x2xf32>
    %111 = math.absf %110 : vector<1x2xf32>
    %112 = vector.extract_strided_slice %66 {offsets = [0, 0], sizes = [1, 2], strides = [1, 1]} : vector<4x2xf32> to vector<1x2xf32>
    %113 = vector.extract_strided_slice %66 {offsets = [1, 0], sizes = [1, 2], strides = [1, 1]} : vector<4x2xf32> to vector<1x2xf32>
    %114 = arith.subf %112, %113 : vector<1x2xf32>
    %115 = math.absf %114 : vector<1x2xf32>
    %cst_22 = arith.constant 3.14159274 : f32
    %116 = vector.broadcast %cst_22 : f32 to vector<1x2xf32>
    %117 = arith.cmpf ogt, %115, %116 : vector<1x2xf32>
    %cst_23 = arith.constant 6.28318548 : f32
    %118 = vector.broadcast %cst_23 : f32 to vector<1x2xf32>
    %119 = arith.subf %118, %115 : vector<1x2xf32>
    %120 = arith.select %117, %119, %115 : vector<1x2xi1>, vector<1x2xf32>
    %121 = arith.mulf %111, %111 : vector<1x2xf32>
    %122 = arith.mulf %120, %120 : vector<1x2xf32>
    %123 = arith.addf %121, %122 : vector<1x2xf32>
    %cst_24 = arith.constant 1.000000e-10 : f32
    %124 = vector.broadcast %cst_24 : f32 to vector<1x2xf32>
    %125 = arith.maximumf %123, %124 : vector<1x2xf32>
    %126 = math.sqrt %125 : vector<1x2xf32>
    %127 = vector.extract_strided_slice %27 {offsets = [2, 0], sizes = [1, 2], strides = [1, 1]} : vector<4x2xf32> to vector<1x2xf32>
    %128 = vector.extract_strided_slice %27 {offsets = [3, 0], sizes = [1, 2], strides = [1, 1]} : vector<4x2xf32> to vector<1x2xf32>
    %129 = arith.subf %127, %128 : vector<1x2xf32>
    %130 = math.absf %129 : vector<1x2xf32>
    %131 = vector.extract_strided_slice %66 {offsets = [2, 0], sizes = [1, 2], strides = [1, 1]} : vector<4x2xf32> to vector<1x2xf32>
    %132 = vector.extract_strided_slice %66 {offsets = [3, 0], sizes = [1, 2], strides = [1, 1]} : vector<4x2xf32> to vector<1x2xf32>
    %133 = arith.subf %131, %132 : vector<1x2xf32>
    %134 = math.absf %133 : vector<1x2xf32>
    %cst_25 = arith.constant 3.14159274 : f32
    %135 = vector.broadcast %cst_25 : f32 to vector<1x2xf32>
    %136 = arith.cmpf ogt, %134, %135 : vector<1x2xf32>
    %cst_26 = arith.constant 6.28318548 : f32
    %137 = vector.broadcast %cst_26 : f32 to vector<1x2xf32>
    %138 = arith.subf %137, %134 : vector<1x2xf32>
    %139 = arith.select %136, %138, %134 : vector<1x2xi1>, vector<1x2xf32>
    %140 = arith.mulf %130, %130 : vector<1x2xf32>
    %141 = arith.mulf %139, %139 : vector<1x2xf32>
    %142 = arith.addf %140, %141 : vector<1x2xf32>
    %cst_27 = arith.constant 1.000000e-10 : f32
    %143 = vector.broadcast %cst_27 : f32 to vector<1x2xf32>
    %144 = arith.maximumf %142, %143 : vector<1x2xf32>
    %145 = math.sqrt %144 : vector<1x2xf32>
    %146 = vector.extract_strided_slice %4 {offsets = [0, 0], sizes = [1, 2], strides = [1, 1]} : vector<4x2xf32> to vector<1x2xf32>
    %cst_28 = arith.constant 0.000000e+00 : f32
    %147 = vector.broadcast %cst_28 : f32 to vector<1x2xf32>
    %148 = arith.addf %147, %146 : vector<1x2xf32>
    %149 = vector.extract_strided_slice %4 {offsets = [1, 0], sizes = [1, 2], strides = [1, 1]} : vector<4x2xf32> to vector<1x2xf32>
    %150 = arith.addf %148, %149 : vector<1x2xf32>
    %151 = vector.extract_strided_slice %6 {offsets = [0, 0], sizes = [1, 2], strides = [1, 1]} : vector<4x2xf32> to vector<1x2xf32>
    %cst_29 = arith.constant 0.000000e+00 : f32
    %152 = vector.broadcast %cst_29 : f32 to vector<1x2xf32>
    %153 = arith.addf %152, %151 : vector<1x2xf32>
    %154 = vector.extract_strided_slice %6 {offsets = [1, 0], sizes = [1, 2], strides = [1, 1]} : vector<4x2xf32> to vector<1x2xf32>
    %155 = arith.addf %153, %154 : vector<1x2xf32>
    %156 = vector.extract_strided_slice %8 {offsets = [0, 0], sizes = [1, 2], strides = [1, 1]} : vector<4x2xf32> to vector<1x2xf32>
    %cst_30 = arith.constant 0.000000e+00 : f32
    %157 = vector.broadcast %cst_30 : f32 to vector<1x2xf32>
    %158 = arith.addf %157, %156 : vector<1x2xf32>
    %159 = vector.extract_strided_slice %8 {offsets = [1, 0], sizes = [1, 2], strides = [1, 1]} : vector<4x2xf32> to vector<1x2xf32>
    %160 = arith.addf %158, %159 : vector<1x2xf32>
    %161 = vector.extract_strided_slice %10 {offsets = [0, 0], sizes = [1, 2], strides = [1, 1]} : vector<4x2xf32> to vector<1x2xf32>
    %cst_31 = arith.constant 0.000000e+00 : f32
    %162 = vector.broadcast %cst_31 : f32 to vector<1x2xf32>
    %163 = arith.addf %162, %161 : vector<1x2xf32>
    %164 = vector.extract_strided_slice %10 {offsets = [1, 0], sizes = [1, 2], strides = [1, 1]} : vector<4x2xf32> to vector<1x2xf32>
    %165 = arith.addf %163, %164 : vector<1x2xf32>
    %166 = arith.mulf %150, %150 : vector<1x2xf32>
    %167 = arith.mulf %155, %155 : vector<1x2xf32>
    %168 = arith.subf %166, %167 : vector<1x2xf32>
    %169 = arith.mulf %160, %160 : vector<1x2xf32>
    %170 = arith.subf %168, %169 : vector<1x2xf32>
    %171 = arith.mulf %165, %165 : vector<1x2xf32>
    %172 = arith.subf %170, %171 : vector<1x2xf32>
    %cst_32 = arith.constant 1.000000e-10 : f32
    %173 = vector.broadcast %cst_32 : f32 to vector<1x2xf32>
    %174 = arith.maximumf %172, %173 : vector<1x2xf32>
    %175 = math.sqrt %174 : vector<1x2xf32>
    %176 = vector.extract_strided_slice %4 {offsets = [0, 0], sizes = [1, 2], strides = [1, 1]} : vector<4x2xf32> to vector<1x2xf32>
    %cst_33 = arith.constant 0.000000e+00 : f32
    %177 = vector.broadcast %cst_33 : f32 to vector<1x2xf32>
    %178 = arith.addf %177, %176 : vector<1x2xf32>
    %179 = vector.extract_strided_slice %4 {offsets = [1, 0], sizes = [1, 2], strides = [1, 1]} : vector<4x2xf32> to vector<1x2xf32>
    %180 = arith.addf %178, %179 : vector<1x2xf32>
    %181 = vector.extract_strided_slice %4 {offsets = [2, 0], sizes = [1, 2], strides = [1, 1]} : vector<4x2xf32> to vector<1x2xf32>
    %182 = arith.addf %180, %181 : vector<1x2xf32>
    %183 = vector.extract_strided_slice %4 {offsets = [3, 0], sizes = [1, 2], strides = [1, 1]} : vector<4x2xf32> to vector<1x2xf32>
    %184 = arith.addf %182, %183 : vector<1x2xf32>
    %185 = vector.extract_strided_slice %6 {offsets = [0, 0], sizes = [1, 2], strides = [1, 1]} : vector<4x2xf32> to vector<1x2xf32>
    %cst_34 = arith.constant 0.000000e+00 : f32
    %186 = vector.broadcast %cst_34 : f32 to vector<1x2xf32>
    %187 = arith.addf %186, %185 : vector<1x2xf32>
    %188 = vector.extract_strided_slice %6 {offsets = [1, 0], sizes = [1, 2], strides = [1, 1]} : vector<4x2xf32> to vector<1x2xf32>
    %189 = arith.addf %187, %188 : vector<1x2xf32>
    %190 = vector.extract_strided_slice %6 {offsets = [2, 0], sizes = [1, 2], strides = [1, 1]} : vector<4x2xf32> to vector<1x2xf32>
    %191 = arith.addf %189, %190 : vector<1x2xf32>
    %192 = vector.extract_strided_slice %6 {offsets = [3, 0], sizes = [1, 2], strides = [1, 1]} : vector<4x2xf32> to vector<1x2xf32>
    %193 = arith.addf %191, %192 : vector<1x2xf32>
    %194 = vector.extract_strided_slice %8 {offsets = [0, 0], sizes = [1, 2], strides = [1, 1]} : vector<4x2xf32> to vector<1x2xf32>
    %cst_35 = arith.constant 0.000000e+00 : f32
    %195 = vector.broadcast %cst_35 : f32 to vector<1x2xf32>
    %196 = arith.addf %195, %194 : vector<1x2xf32>
    %197 = vector.extract_strided_slice %8 {offsets = [1, 0], sizes = [1, 2], strides = [1, 1]} : vector<4x2xf32> to vector<1x2xf32>
    %198 = arith.addf %196, %197 : vector<1x2xf32>
    %199 = vector.extract_strided_slice %8 {offsets = [2, 0], sizes = [1, 2], strides = [1, 1]} : vector<4x2xf32> to vector<1x2xf32>
    %200 = arith.addf %198, %199 : vector<1x2xf32>
    %201 = vector.extract_strided_slice %8 {offsets = [3, 0], sizes = [1, 2], strides = [1, 1]} : vector<4x2xf32> to vector<1x2xf32>
    %202 = arith.addf %200, %201 : vector<1x2xf32>
    %203 = vector.extract_strided_slice %10 {offsets = [0, 0], sizes = [1, 2], strides = [1, 1]} : vector<4x2xf32> to vector<1x2xf32>
    %cst_36 = arith.constant 0.000000e+00 : f32
    %204 = vector.broadcast %cst_36 : f32 to vector<1x2xf32>
    %205 = arith.addf %204, %203 : vector<1x2xf32>
    %206 = vector.extract_strided_slice %10 {offsets = [1, 0], sizes = [1, 2], strides = [1, 1]} : vector<4x2xf32> to vector<1x2xf32>
    %207 = arith.addf %205, %206 : vector<1x2xf32>
    %208 = vector.extract_strided_slice %10 {offsets = [2, 0], sizes = [1, 2], strides = [1, 1]} : vector<4x2xf32> to vector<1x2xf32>
    %209 = arith.addf %207, %208 : vector<1x2xf32>
    %210 = vector.extract_strided_slice %10 {offsets = [3, 0], sizes = [1, 2], strides = [1, 1]} : vector<4x2xf32> to vector<1x2xf32>
    %211 = arith.addf %209, %210 : vector<1x2xf32>
    %212 = arith.mulf %184, %184 : vector<1x2xf32>
    %213 = arith.mulf %193, %193 : vector<1x2xf32>
    %214 = arith.subf %212, %213 : vector<1x2xf32>
    %215 = arith.mulf %202, %202 : vector<1x2xf32>
    %216 = arith.subf %214, %215 : vector<1x2xf32>
    %217 = arith.mulf %211, %211 : vector<1x2xf32>
    %218 = arith.subf %216, %217 : vector<1x2xf32>
    %cst_37 = arith.constant 1.000000e-10 : f32
    %219 = vector.broadcast %cst_37 : f32 to vector<1x2xf32>
    %220 = arith.maximumf %218, %219 : vector<1x2xf32>
    %221 = math.sqrt %220 : vector<1x2xf32>
    %222 = vector.extract_strided_slice %66 {offsets = [0, 0], sizes = [1, 2], strides = [1, 1]} : vector<4x2xf32> to vector<1x2xf32>
    %223 = vector.extract_strided_slice %66 {offsets = [2, 0], sizes = [1, 2], strides = [1, 1]} : vector<4x2xf32> to vector<1x2xf32>
    %224 = arith.subf %222, %223 : vector<1x2xf32>
    %225 = math.absf %224 : vector<1x2xf32>
    %cst_38 = arith.constant 3.14159274 : f32
    %226 = vector.broadcast %cst_38 : f32 to vector<1x2xf32>
    %227 = arith.cmpf ogt, %225, %226 : vector<1x2xf32>
    %cst_39 = arith.constant 6.28318548 : f32
    %228 = vector.broadcast %cst_39 : f32 to vector<1x2xf32>
    %229 = arith.subf %228, %225 : vector<1x2xf32>
    %230 = arith.select %227, %229, %225 : vector<1x2xi1>, vector<1x2xf32>
    %231 = vector.extract_strided_slice %27 {offsets = [1, 0], sizes = [1, 2], strides = [1, 1]} : vector<4x2xf32> to vector<1x2xf32>
    %232 = vector.extract_strided_slice %27 {offsets = [3, 0], sizes = [1, 2], strides = [1, 1]} : vector<4x2xf32> to vector<1x2xf32>
    %233 = arith.subf %231, %232 : vector<1x2xf32>
    %234 = math.absf %233 : vector<1x2xf32>
    %235 = tpu.concatenate %126, %145, %175, %221, %230, %234 in 0 : vector<1x2xf32>, vector<1x2xf32>, vector<1x2xf32>, vector<1x2xf32>, vector<1x2xf32>, vector<1x2xf32> -> vector<6x2xf32>
    %c32 = arith.constant 32 : index
    %c0_40 = arith.constant 0 : index
    %236 = vector.load %arg2[%c32, %c0_40] : memref<38x2xf32, #tpu.memory_space<vmem>>, vector<6x2xf32>
    tpu.vector_store %arg2[%c32, %c0_40], %235 {strides = array<i32>} : memref<38x2xf32, #tpu.memory_space<vmem>>, vector<6x2xf32>,
    return
  }
  func.func @transform_0(%arg0: i32) -> (i32, i32, i32) {
    %c0_i32 = arith.constant 0 : i32
    %c0_i32_0 = arith.constant 0 : i32
    %c0_i32_1 = arith.constant 0 : i32
    return %c0_i32, %c0_i32_0, %arg0 : i32, i32, i32
  }
  func.func @transform_1(%arg0: i32) -> (i32, i32) {
    %c0_i32 = arith.constant 0 : i32
    %c0_i32_0 = arith.constant 0 : i32
    return %c0_i32, %arg0 : i32, i32
  }
}

</mosaic_0001>

<bundles_post_ra>
// kernel: aug_features.1
= control target key start
LH: loop header
LB: loop body
LE: loop exit
PB: predicated region body
PF: predicated region fallthrough
CT: control target
= control target key end

     0   :  { %vm94_vm7 = vcmask 1040384   ;;  %vm96_vm9 = vcmask 1041408   ;;  %vm98_vm10 = vcmask 1042432   ;;  %vm100_vm11 = vcmask 1043456   ;;  %s502_s0 = inlined_call_operand.vmem [shape: f32[4,4,2], index: 0, kind: input, shape index: {}]   ;;  %s503_s1 = inlined_call_operand.vmem [shape: f32[38,2], index: 1, kind: output, shape index: {}]  }
   0x1   :  { %v8_v0 = vld [vmem:[%s502_s0] sm:$0xf]  ;;  %v9_v1 = vld [vmem:[%s502_s0 + $0x4] sm:$0xf]  ;;  %v10_v2 = vld [vmem:[%s502_s0 + $0x8] sm:$0xf] }
   0x2   :  { %v11_v3 = vld [vmem:[%s502_s0 + $0xc] sm:$0xf]  ;;  %v334_v4 = vmul.f32 2.0, %v9_v1  ;;  %v336_v5 = vmul.f32 2.0, %v10_v2  ;;  %v338_v6 = vmul.f32 2.0, %v8_v0  ;;  %vm102_vm12 = vcmask 1044480  }
   0x3   :  { %v340_v7 = vmul.f32 2.0, %v11_v3  ;;  %vm104_vm13 = vcmask 1045504   ;;  %vm106_vm14 = vcmask 1046528   ;;  %vm108_vm15 = vcmask 15360  }
   0x4   :  { %v16_v8 = vmul.f32 %v334_v4, %v334_v4  ;;  %v17_v9 = vmul.f32 %v336_v5, %v336_v5  ;;  %v347_v10 = vand.u32 2147483647, %v334_v4  ;;  %v350_v11 = vand.u32 2147483647, %v336_v5 }
   0x5   :  { %v27_v12 = vmul.f32 %v340_v7, %v340_v7  ;;  %v111_v15 = vrot.slane %v338_v6, 1  ;;  %v133_v19 = vrot.slane %v338_v6, 2  ;;  %v135_v20 = vrot.slane %v334_v4, 1 }
   0x6   :  { %v18_v13 = vadd.f32 %v17_v9, %v16_v8  ;;  %v46_v14 = vmax.f32 %v347_v10, %v350_v11  ;;  %v155_v24 = vrot.slane %v338_v6, 3  ;;  %v157_v25 = vrot.slane %v334_v4, 2 }
   0x7   :  { %v200_v18 = vadd.f32 %v111_v15, %v338_v6  ;;  %v202_v22 = vadd.f32 %v135_v20, %v334_v4  ;;  %v159_v27 = vrot.slane %v336_v5, 1  ;;  %v206_v28 = vrot.slane %v340_v7, 1 }
   0x8   :  { %v28_v16 = vadd.f32 %v27_v12, %v18_v13  ;;  %294 = vrcp.f32 %v46_v14  ;;  %v227_v30 = vrot.slane %v334_v4, 3  ;;  %v47_v31 = vmin.f32 %v347_v10, %v350_v11 }
   0x9   :  { %v209_v21 = vmul.f32 %v200_v18, %v200_v18  ;;  %v224_v23 = vadd.f32 %v200_v18, %v133_v19  ;;  %v210_v26 = vmul.f32 %v202_v22, %v202_v22  ;;  %v226_v29 = vadd.f32 %v202_v22, %v157_v25 }
   0xa   :  { %v29_v17 = vmax.f32 %v28_v16, 1e-10  ;;  %v204_v32 = vadd.f32 %v159_v27, %v336_v5  ;;  %v208_v33 = vadd.f32 %v206_v28, %v340_v7  ;;  %v230_v37 = vrot.slane %v336_v5, 2 }
   0xb   :  { %v211_v34 = vsub.f32 %v209_v21, %v210_v26  ;;  %v225_v35 = vadd.f32 %v224_v23, %v155_v24  ;;  %v229_v36 = vadd.f32 %v227_v30, %v226_v29  ;;  %v233_v40 = vrot.slane %v336_v5, 3 }
   0xc   :  { %296 = vrsqrt.f32 %v29_v17  ;;  %v212_v38 = vmul.f32 %v204_v32, %v204_v32  ;;  %v383_v39 = vmul.f32 %v208_v33, %v208_v33  ;;  %v236_v41 = vrot.slane %v340_v7, 2 }
   0xd   :  { %vm50_vm0 = vcmp.gt.f32.partialorder %v46_v14, 0.0  ;;  %v232_v45 = vadd.f32 %v230_v37, %v204_v32  ;;  %v239_v47 = vrot.slane %v340_v7, 3  ;;  %v242_v48 = vmul.f32 %v225_v35, %v225_v35 }
   0xe   :  { %v387_v44 = vsub.f32 %v211_v34, %v212_v38  ;;  %v238_v46 = vadd.f32 %v236_v41, %v208_v33  ;;  %v243_v49 = vmul.f32 %v229_v36, %v229_v36  ;;  %vm32_vm1 = vcmp.eq.f32.partialorder %v29_v17, inf }
   0xf   :  { %v235_v52 = vadd.f32 %v233_v40, %v232_v45  ;;  %v35_v57 = vand.u32 2147483648, %v29_v17  ;;  %vm34_vm2 = vcmp.eq.f32.partialorder %v29_v17, 0.0  ;;  %v19_v1 = vmax.f32 %v18_v13, 1e-10 }
  0x10   :  { %v215_v51 = vsub.f32 %v387_v44, %v383_v39  ;;  %v241_v54 = vadd.f32 %v239_v47, %v238_v46  ;;  %v244_v55 = vsub.f32 %v242_v48, %v243_v49  ;;  %vm62_vm3 = vcmp.gt.f32.partialorder %v350_v11, %v347_v10 }
  0x11   :  { %v245_v58 = vmul.f32 %v235_v52, %v235_v52  ;;  %vm65_vm4 = vcmp.lt.f32.partialorder %v334_v4, 0.0  ;;  %vm68_vm5 = vcmp.lt.f32.partialorder %v336_v5, 0.0  ;;  %vm22_vm6 = vcmp.eq.f32.partialorder %v19_v1, inf }
  0x12   :  { %v392_v61 = vmul.f32 %v241_v54, %v241_v54  ;;  %v74_v34 = vrot.slane %v334_v4, 7  ;;  %v25_v35 = vand.u32 2147483648, %v19_v1  ;;  %vm24_vm8 = vcmp.eq.f32.partialorder %v19_v1, 0.0 }
  0x13   :  { %v394_v0 = vsub.f32 %v244_v55, %v245_v58  ;;  %v77_v36 = vrot.slane %v336_v5, 6  ;;  %v113_v40 = vrot.slane %v336_v5, 7  ;;  %v147_v45 = vsel %vm94_vm7, %v133_v19, %v135_v20 }
  0x14   :  { %v95_v38 = vsel %vm94_vm7, %v338_v6, %v74_v34  ;;  %v169_v46 = vsel %vm94_vm7, %v155_v24, %v157_v25  ;;  %v80_v48 = vrot.slane %v340_v7, 5 }
  0x15   :  { %v295_v42 = vpop.eup %294  ;;  %v248_v9 = vsub.f32 %v394_v0, %v392_v61  ;;  %v97_v49 = vsel %vm96_vm9, %v95_v38, %v77_v36 }
  0x16   :  { %v49_v43 = vmul.f32 %v295_v42, %v47_v31  ;;  %v99_v25 = vsel %vm98_vm10, %v97_v49, %v80_v48 }
  0x18   :  { %v51_v50 = vsel %vm50_vm0, %v49_v43, 0.0  ;;  %v125_v43 = vsel %vm94_vm7, %v111_v15, %v334_v4  ;;  %v115_v15 = vrot.slane %v340_v7, 6  ;;  %v148_v4 = vsel %vm96_vm9, %v147_v45, %v336_v5 }
  0x19   :  { %v52_v53 = vmul.f32 %v51_v50, %v51_v50  ;;  %v297_v56 = vpop.eup %296  ;;  %v126_v19 = vsel %vm96_vm9, %v125_v43, %v113_v40 }
  0x1a   :  { %v31_v59 = vmul.f32 %v297_v56, %v29_v17  ;;  %v127_v56 = vsel %vm98_vm10, %v126_v19, %v115_v15 }
  0x1b   :  { %v53_v60 = vmul.f32 0.0208351, %v52_v53 }
  0x1c   :  { %v33_v62 = vsel %vm32_vm1, %v29_v17, %v31_v59 }
  0x1d   :  { %v292_v63 = vadd.f32 -0.085133, %v53_v60  ;;  %v36_v2 = vsel %vm34_vm2, %v35_v57, %v33_v62 }
  0x1e   :  { %v38_v3 = vsub.f32 %v36_v2, %v340_v7  ;;  %v37_v17 = vadd.f32 %v36_v2, %v340_v7 }
  0x1f   :  { %v55_v8 = vmul.f32 %v292_v63, %v52_v53 }
  0x20   :  { %298 = vrcp.f32 %v38_v3  ;;  %v447_v3 = vmax.f32 %v215_v51, 1e-10  ;;  %v249_v51 = vmax.f32 %v248_v9, 1e-10 }
  0x21   :  { %v56_v12 = vadd.f32 0.180141, %v55_v8  ;;  %300 = vrsqrt.f32 %v19_v1 }
  0x22   :  { %302 = vlog2.f32 %v338_v6  ;;  %v170_v6 = vsel %vm96_vm9, %v169_v46, %v159_v27  ;;  %vm219_vm1 = vcmp.eq.f32.partialorder %v447_v3, inf  ;;  %vm252_vm2 = vcmp.eq.f32.partialorder %v249_v51, inf }
  0x23   :  { %v57_v14 = vmul.f32 %v56_v12, %v52_v53  ;;  %v171_v5 = vsel %vm98_vm10, %v170_v6, %v340_v7  ;;  %v255_v19 = vand.u32 2147483648, %v249_v51 }
  0x25   :  { %v293_v16 = vadd.f32 -0.3302995, %v57_v14 }
  0x27   :  { %v59_v18 = vmul.f32 %v293_v16, %v52_v53 }
  0x29   :  { %v60_v21 = vadd.f32 0.999866, %v59_v18 }
  0x2b   :  { %v61_v22 = vmul.f32 %v60_v21, %v51_v50  ;;  %v137_v50 = vrot.slane %v340_v7, 7 }
  0x2d   :  { %v63_v13 = vsub.f32 1.5707964, %v61_v22  ;;  %v299_v23 = vpop.eup %298  ;;  %v149_v57 = vsel %vm98_vm10, %v148_v4, %v137_v50  ;;  %v222_v50 = vand.u32 2147483648, %v447_v3 }
  0x2e   :  { %v301_v26 = vpop.eup %300  ;;  %v40_v28 = vmul.f32 %v299_v23, %v37_v17 }
  0x2f   :  { %v64_v29 = vsel %vm62_vm3, %v63_v13, %v61_v22  ;;  %v21_v31 = vmul.f32 %v301_v26, %v19_v1  ;;  %v303_v41 = vpop.eup %302  ;;  %vm221_vm3 = vcmp.eq.f32.partialorder %v447_v3, 0.0 }
  0x30   :  { %v66_v30 = vsub.f32 3.1415927, %v64_v29  ;;  %304 = vlog2.f32 %v40_v28  ;;  %v72_v52 = vmul.f32 0.6931472, %v303_v41 }
  0x31   :  { %v23_v11 = vsel %vm22_vm6, %v19_v1, %v21_v31  ;;  %306 = vrsqrt.f32 %v447_v3 }
  0x32   :  { %v67_v32 = vsel %vm65_vm4, %v66_v30, %v64_v29  ;;  %v26_v47 = vsel %vm24_vm8, %v25_v35, %v23_v11  ;;  %v92_v27 = vrot.slane %v72_v52, 1  ;;  %v123_v60 = vrot.slane %v72_v52, 2 }
  0x33   :  { %v69_v33 = vsub.f32 0.0, %v67_v32  ;;  %v83_v20 = vrot.slane %v26_v47, 4  ;;  %v117_v53 = vrot.slane %v26_v47, 5  ;;  %v139_v54 = vrot.slane %v26_v47, 6 }
  0x34   :  { %v161_v58 = vrot.slane %v26_v47, 7  ;;  %v145_v62 = vrot.slane %v72_v52, 3  ;;  %v167_v2 = vrot.slane %v72_v52, 4  ;;  %308 = vrsqrt.f32 %v249_v51 }
  0x35   :  { %v406_v10 = vsel %vm68_vm5, %v69_v33, %v67_v32  ;;  %v101_v63 = vsel %vm100_vm11, %v99_v25, %v83_v20  ;;  %v128_v12 = vsel %vm100_vm11, %v127_v56, %v117_v53  ;;  %v150_v14 = vsel %vm100_vm11, %v149_v57, %v139_v54 }
  0x36   :  { %v181_v37 = vrot.slane %v406_v10, 1  ;;  %v121_v7 = vrot.slane %v406_v10, 3  ;;  %v143_v16 = vrot.slane %v406_v10, 4  ;;  %v165_v18 = vrot.slane %v406_v10, 5 }
  0x37   :  { %v172_v21 = vsel %vm100_vm11, %v171_v5, %v161_v58  ;;  %v89_v44 = vrot.slane %v406_v10, 2  ;;  %vm254_vm4 = vcmp.eq.f32.partialorder %v249_v51, 0.0 }
  0x38   :  { %v183_v42 = vsub.f32 %v406_v10, %v181_v37 }
  0x39   :  { %v257_v45 = vsub.f32 %v406_v10, %v89_v44 }
  0x3a   :  { %v184_v24 = vand.u32 2147483647, %v183_v42 }
  0x3b   :  { %v258_v48 = vand.u32 2147483647, %v257_v45 }
  0x3c   :  { %v186_v1 = vsub.f32 6.2831855, %v184_v24  ;;  %vm185_vm0 = vcmp.gt.f32.partialorder %v184_v24, 3.1415927 }
  0x3d   :  { %v305_v55 = vpop.eup %304  ;;  %v260_v6 = vsub.f32 6.2831855, %v258_v48  ;;  %vm259_vm6 = vcmp.gt.f32.partialorder %v258_v48, 3.1415927 }
  0x3e   :  { %v42_v59 = vmul.f32 0.6931472, %v305_v55  ;;  %v187_v26 = vsel %vm185_vm0, %v186_v1, %v184_v24  ;;  %v307_v43 = vpop.eup %306 }
  0x3f   :  { %v189_v38 = vmul.f32 %v187_v26, %v187_v26  ;;  %v218_v47 = vmul.f32 %v307_v43, %v447_v3  ;;  %v261_v56 = vsel %vm259_vm6, %v260_v6, %v258_v48 }
  0x40   :  { %v43_v8 = vmul.f32 0.5, %v42_v59 }
  0x41   :  { %v309_v46 = vpop.eup %308  ;;  %v220_v52 = vsel %vm219_vm1, %v447_v3, %v218_v47 }
  0x42   :  { %v86_v17 = vrot.slane %v43_v8, 3  ;;  %v119_v22 = vrot.slane %v43_v8, 4  ;;  %v141_v13 = vrot.slane %v43_v8, 5  ;;  %v163_v39 = vrot.slane %v43_v8, 6 }
  0x43   :  { %v177_v23 = vrot.slane %v43_v8, 1  ;;  %v251_v49 = vmul.f32 %v309_v46, %v249_v51  ;;  %v262_v15 = vrot.slane %v43_v8, 2  ;;  %v223_v53 = vsel %vm221_vm3, %v222_v50, %v220_v52 }
  0x44   :  { %v103_v28 = vsel %vm102_vm12, %v101_v63, %v86_v17  ;;  %v129_v29 = vsel %vm102_vm12, %v128_v12, %v119_v22  ;;  %v151_v30 = vsel %vm102_vm12, %v150_v14, %v141_v13  ;;  %v173_v31 = vsel %vm102_vm12, %v172_v21, %v163_v39 }
  0x45   :  { %v105_v32 = vsel %vm104_vm13, %v103_v28, %v89_v44  ;;  %v130_v33 = vsel %vm104_vm13, %v129_v29, %v121_v7  ;;  %v152_v34 = vsel %vm104_vm13, %v151_v30, %v143_v16  ;;  %v174_v35 = vsel %vm104_vm13, %v173_v31, %v165_v18 }
  0x46   :  { %v107_v61 = vsel %vm106_vm14, %v105_v32, %v92_v27  ;;  %v131_v0 = vsel %vm106_vm14, %v130_v33, %v123_v60  ;;  %v153_v9 = vsel %vm106_vm14, %v152_v34, %v145_v62  ;;  %v175_v11 = vsel %vm106_vm14, %v174_v35, %v167_v2 }
  0x47   :  { %109 = vst.msk [vmem:[%s503_s1] sm:$0xff] %vm108_vm15, %v107_v61  ;;  %132 = vst.msk [vmem:[%s503_s1 + $0x8] sm:$0xff] %vm108_vm15, %v131_v0  ;;  %v179_v36 = vsub.f32 %v43_v8, %v177_v23  ;;  %v253_v4 = vsel %vm252_vm2, %v249_v51, %v251_v49  ;;  %v264_v10 = vsub.f32 %v43_v8, %v262_v15  ;;  %v270_v5 = vrot.slane %v223_v53, 6 }
  0x48   :  { %154 = vst.msk [vmem:[%s503_s1 + $0x10] sm:$0xff] %vm108_vm15, %v153_v9  ;;  %176 = vst.msk [vmem:[%s503_s1 + $0x18] sm:$0xff] %vm108_vm15, %v175_v11  ;;  %v256_v54 = vsel %vm254_vm4, %v255_v19, %v253_v4  ;;  %v276_v60 = vrot.slane %v261_v56, 4  ;;  %vm286_vm13 = vcmask 13312  }
  0x49   :  { %v180_v37 = vand.u32 2147483647, %v179_v36  ;;  %v265_v57 = vand.u32 2147483647, %v264_v10  ;;  %v273_v27 = vrot.slane %v256_v54, 5 }
  0x4b   :  { %v188_v40 = vmul.f32 %v180_v37, %v180_v37  ;;  %v279_v62 = vrot.slane %v265_v57, 4 }
  0x4d   :  { %v190_v41 = vadd.f32 %v189_v38, %v188_v40 }
  0x4f   :  { %v191_v42 = vmax.f32 %v190_v41, 1e-10 }
  0x51   :  { %310 = vrsqrt.f32 %v191_v42  ;;  %vm194_vm5 = vcmp.eq.f32.partialorder %v191_v42, inf  ;;  %v197_v24 = vand.u32 2147483648, %v191_v42  ;;  %vm196_vm8 = vcmp.eq.f32.partialorder %v191_v42, 0.0 }
  0x5e   :  { %v311_v20 = vpop.eup %310 }
  0x5f   :  { %v193_v25 = vmul.f32 %v311_v20, %v191_v42 }
  0x61   :  { %v195_v55 = vsel %vm194_vm5, %v191_v42, %v193_v25 }
  0x62   :  { %v198_v58 = vsel %vm196_vm8, %v197_v24, %v195_v55 }
  0x63   :  { %v267_v59 = vrot.slane %v198_v58, 1 }
  0x65   :  { %v281_v63 = vsel %vm94_vm7, %v198_v58, %v267_v59 }
  0x66   :  { %v282_v1 = vsel %vm96_vm9, %v281_v63, %v270_v5 }
  0x67   :  { %v283_v2 = vsel %vm98_vm10, %v282_v1, %v273_v27 }
  0x68   :  { %v284_v3 = vsel %vm100_vm11, %v283_v2, %v276_v60 }
  0x69   :  { %v285_v8 = vsel %vm102_vm12, %v284_v3, %v279_v62 }
  0x6a   :  { %287 = vst.msk [vmem:[%s503_s1 + $0x20] sm:$0x3f] %vm286_vm13, %v285_v8 }

</bundles_post_ra>
